<compile_context>
chip_gen: v5e
topology: v5e:2x2
jax: 0.10.0
libtpu: 0.0.40
codegen_flags: <defaults>
</compile_context>

<pallas_src>
import math
import jax
import jax.numpy as jnp
from jax.experimental import pallas as pl
from jax.experimental.pallas import tpu as pltpu

LANE = 128        # TPU vreg lane width
BF16_ROWS = 16    # bf16 sublane packing -> keep partial-batch tiles 16-aligned


def _round_up(x, m):
    return (x + m - 1) // m * m


def mlp_kernel(x_ref, w1_ref, b1_ref, w2_ref, b2_ref, w3_ref, b3_ref, o_ref):
    # fc1 + ReLU: cast the f32 x tile to bf16 right before the MXU dot,
    # accumulate in f32, keep bias/ReLU math in f32.
    x = x_ref[...].astype(jnp.bfloat16)
    h1 = jnp.dot(x, w1_ref[...], preferred_element_type=jnp.float32)
    h1 = jnp.maximum(h1 + b1_ref[...], 0.0)
    # fc2 + ReLU
    h2 = jnp.dot(h1.astype(w2_ref.dtype), w2_ref[...],
                 preferred_element_type=jnp.float32)
    h2 = jnp.maximum(h2 + b2_ref[...], 0.0)
    # fc3 (no activation); output is lane-dense (n_actions zero-padded to 128)
    out = jnp.dot(h2.astype(w3_ref.dtype), w3_ref[...],
                  preferred_element_type=jnp.float32)
    o_ref[...] = (out + b3_ref[...]).astype(o_ref.dtype)


def init_params(key, n_states, n_actions, n_dims=128):
    """PyTorch nn.Linear-style init (uniform +-1/sqrt(fan_in)).
    Returns unpadded f32 params, weights stored as [in, out]."""
    keys = jax.random.split(key, 6)

    def linear(kw, kb, fan_in, fan_out):
        bound = 1.0 / math.sqrt(fan_in)
        w = jax.random.uniform(kw, (fan_in, fan_out), jnp.float32, -bound, bound)
        b = jax.random.uniform(kb, (1, fan_out), jnp.float32, -bound, bound)
        return w, b

    w1, b1 = linear(keys[0], keys[1], n_states, n_dims)
    w2, b2 = linear(keys[2], keys[3], n_dims, n_dims)
    w3, b3 = linear(keys[4], keys[5], n_dims, n_actions)
    return {"w1": w1, "b1": b1, "w2": w2, "b2": b2, "w3": w3, "b3": b3}


def prepare_params(raw):
    """One-time packing for the kernel.

    w1/w2 are cast to bf16 but kept UNPADDED on the input-feature (K) dim;
    only the fc3 output dim is zero-padded to the 128-lane boundary so the
    final store is a full unmasked 128-lane vector store. Biases stay f32."""
    n_states, n_dims = raw["w1"].shape
    n_actions = raw["w3"].shape[1]
    npad = _round_up(n_actions, LANE)   # lane-dense output columns

    def pad_w(w, rows, cols):
        out = jnp.zeros((rows, cols), jnp.float32)
        return out.at[: w.shape[0], : w.shape[1]].set(w).astype(jnp.bfloat16)

    def pad_b(b, cols):
        out = jnp.zeros((1, cols), jnp.float32)
        return out.at[:, : b.shape[1]].set(b)

    return {
        "w1": raw["w1"].astype(jnp.bfloat16),    # [n_states, n_dims], unpadded K
        "b1": raw["b1"],
        "w2": raw["w2"].astype(jnp.bfloat16),
        "b2": raw["b2"],
        "w3": pad_w(raw["w3"], n_dims, npad),    # [n_dims, npad]
        "b3": pad_b(raw["b3"], npad),
        "n_states": n_states,
        "n_actions": n_actions,
    }


def mlp_forward(x, p, tile_b=1024, trim=True):
    """x: [B, n_states] float32. p: output of prepare_params.

    trim=True  -> returns [B, n_actions] (extra column-slice pass).
    trim=False -> returns the lane-dense [B, npad] bf16 buffer; use when the
                  consumer can read the first n_actions columns directly (the
                  slice is a separate strided re-read of the largest array).
    """
    B, n_states = x.shape
    assert n_states == p["n_states"]
    npad = p["w3"].shape[1]
    n_actions = p["n_actions"]

    # Batch tile selection. Big tiles for this HBM-bound kernel (keep >=512 on
    # all of v5e/v6e/v7x). If one step would cover the whole batch but B is
    # big enough to split, use (at least) two steps so the "parallel" axis can
    # shard across v7x's two TensorCores. Partial-batch tiles are kept
    # 16-row aligned so the bf16 output blocks stay legally tiled.
    tb = min(tile_b, B)
    if pl.cdiv(B, tb) < 2 and B >= 2 * BF16_ROWS:
        tb = _round_up(pl.cdiv(B, 2), BF16_ROWS)
    grid = (pl.cdiv(B, tb),)

    # Weights/biases: whole-array blocks, VMEM-resident across the batch grid.
    full = lambda a: pl.BlockSpec(a.shape, lambda i: (0,) * a.ndim)

    out = pl.pallas_call(
        mlp_kernel,
        out_shape=jax.ShapeDtypeStruct((B, npad), jnp.bfloat16),
        grid=grid,
        in_specs=[
            # x streamed unpadded: [tb, n_states] f32, full (contiguous) last dim.
            pl.BlockSpec((tb, n_states), lambda i: (i, 0)),
            full(p["w1"]), full(p["b1"]),
            full(p["w2"]), full(p["b2"]),
            full(p["w3"]), full(p["b3"]),
        ],
        out_specs=pl.BlockSpec((tb, npad), lambda i: (i, 0)),
        compiler_params=pltpu.CompilerParams(
            dimension_semantics=("parallel",),
            vmem_limit_bytes=32 * 1024 * 1024,
        ),
    )(x, p["w1"], p["b1"], p["w2"], p["b2"], p["w3"], p["b3"])

    # TODO(synk): if the output DMA still dominates at very large B, compact
    # 32 batch rows x n_actions into one 128-lane row before the store instead
    # of padding columns to 128.
    if trim:
        return out[:, :n_actions]
    return out


if __name__ == "__main__":
    key = jax.random.PRNGKey(0)
    k_x, k_p, k_x2 = jax.random.split(key, 3)

    batch = 8
    n_states = 16
    n_actions = 4
    n_dims = 128

    raw = init_params(k_p, n_states, n_actions, n_dims)
    params = prepare_params(raw)

    def ref_fwd(xs):
        h1 = jnp.maximum(xs @ raw["w1"] + raw["b1"], 0.0)
        h2 = jnp.maximum(h1 @ raw["w2"] + raw["b2"], 0.0)
        return h2 @ raw["w3"] + raw["b3"]

    # Small-batch path (single full-batch block).
    x = jax.random.normal(k_x, (batch, n_states), jnp.float32)
    out = mlp_forward(x, params)
    jax.block_until_ready(out)
    ref = ref_fwd(x)
    assert out.shape == (batch, n_actions)
    # bf16 matmul inputs + bf16 output store (f32 accumulate) -> loose tol.
    assert jnp.allclose(out.astype(jnp.float32), ref, atol=5e-2, rtol=5e-2), (
        float(jnp.max(jnp.abs(out.astype(jnp.float32) - ref)))
    )

    # Ragged / multi-step path (B=40 -> two grid steps, clipped last block).
    x2 = jax.random.normal(k_x2, (40, n_states), jnp.float32)
    out2 = mlp_forward(x2, params)
    jax.block_until_ready(out2)
    ref2 = ref_fwd(x2)
    assert out2.shape == (40, n_actions)
    assert jnp.allclose(out2.astype(jnp.float32), ref2, atol=5e-2, rtol=5e-2), (
        float(jnp.max(jnp.abs(out2.astype(jnp.float32) - ref2)))
    )

    print("KERNEL_OK")
</pallas_src>

<mosaic_0001>
module attributes {stable_mosaic.version = 11 : i64} {
  func.func @mlp_kernel(%arg0: i32, %arg1: memref<8x16xf32, #tpu.memory_space<vmem>>, %arg2: memref<16x128xbf16, #tpu.memory_space<vmem>>, %arg3: memref<1x128xf32, #tpu.memory_space<vmem>>, %arg4: memref<128x128xbf16, #tpu.memory_space<vmem>>, %arg5: memref<1x128xf32, #tpu.memory_space<vmem>>, %arg6: memref<128x128xbf16, #tpu.memory_space<vmem>>, %arg7: memref<1x128xf32, #tpu.memory_space<vmem>>, %arg8: memref<8x128xbf16, #tpu.memory_space<vmem>>) attributes {dimension_semantics = [#tpu.dimension_semantics<parallel>], iteration_bounds = array<i64: 1>, scalar_prefetch = 0 : i64, scratch_operands = 0 : i64, tpu.core_type = #tpu.core_type<tc>, window_params = [{transform_indices = @transform_0, window_bounds = array<i64: 8, 16>}, {pipeline_mode = #tpu.pipeline_mode<synchronous>, transform_indices = @transform_1, window_bounds = array<i64: 16, 128>}, {pipeline_mode = #tpu.pipeline_mode<synchronous>, transform_indices = @transform_2, window_bounds = array<i64: 1, 128>}, {pipeline_mode = #tpu.pipeline_mode<synchronous>, transform_indices = @transform_3, window_bounds = array<i64: 128, 128>}, {pipeline_mode = #tpu.pipeline_mode<synchronous>, transform_indices = @transform_4, window_bounds = array<i64: 1, 128>}, {pipeline_mode = #tpu.pipeline_mode<synchronous>, transform_indices = @transform_5, window_bounds = array<i64: 128, 128>}, {pipeline_mode = #tpu.pipeline_mode<synchronous>, transform_indices = @transform_6, window_bounds = array<i64: 1, 128>}, {transform_indices = @transform_7, window_bounds = array<i64: 8, 128>}]} {
    %c0 = arith.constant 0 : index
    %c0_0 = arith.constant 0 : index
    %0 = vector.load %arg1[%c0, %c0_0] : memref<8x16xf32, #tpu.memory_space<vmem>>, vector<8x16xf32>
    %1 = arith.truncf %0 : vector<8x16xf32> to vector<8x16xbf16>
    %c0_1 = arith.constant 0 : index
    %c0_2 = arith.constant 0 : index
    %2 = vector.load %arg2[%c0_1, %c0_2] : memref<16x128xbf16, #tpu.memory_space<vmem>>, vector<16x128xbf16>
    %cst = arith.constant dense<0.000000e+00> : vector<8x128xf32>
    %3 = tpu.matmul %1, %2, %cst {dimension_numbers = #tpu.dot_dimension_numbers<[1], [0], [0], [1], [0, 0, 1, 1], [], []>} : vector<8x16xbf16>, vector<16x128xbf16>, vector<8x128xf32> -> vector<8x128xf32>
    %c0_3 = arith.constant 0 : index
    %c0_4 = arith.constant 0 : index
    %4 = vector.load %arg3[%c0_3, %c0_4] : memref<1x128xf32, #tpu.memory_space<vmem>>, vector<1x128xf32>
    %5 = vector.broadcast %4 : vector<1x128xf32> to vector<8x128xf32>
    %6 = arith.addf %3, %5 : vector<8x128xf32>
    %cst_5 = arith.constant 0.000000e+00 : f32
    %7 = vector.broadcast %cst_5 : f32 to vector<8x128xf32>
    %8 = arith.maximumf %6, %7 : vector<8x128xf32>
    %9 = arith.truncf %8 : vector<8x128xf32> to vector<8x128xbf16>
    %c0_6 = arith.constant 0 : index
    %c0_7 = arith.constant 0 : index
    %10 = vector.load %arg4[%c0_6, %c0_7] : memref<128x128xbf16, #tpu.memory_space<vmem>>, vector<128x128xbf16>
    %cst_8 = arith.constant dense<0.000000e+00> : vector<8x128xf32>
    %11 = tpu.matmul %9, %10, %cst_8 {dimension_numbers = #tpu.dot_dimension_numbers<[1], [0], [0], [1], [0, 0, 1, 1], [], []>} : vector<8x128xbf16>, vector<128x128xbf16>, vector<8x128xf32> -> vector<8x128xf32>
    %c0_9 = arith.constant 0 : index
    %c0_10 = arith.constant 0 : index
    %12 = vector.load %arg5[%c0_9, %c0_10] : memref<1x128xf32, #tpu.memory_space<vmem>>, vector<1x128xf32>
    %13 = vector.broadcast %12 : vector<1x128xf32> to vector<8x128xf32>
    %14 = arith.addf %11, %13 : vector<8x128xf32>
    %cst_11 = arith.constant 0.000000e+00 : f32
    %15 = vector.broadcast %cst_11 : f32 to vector<8x128xf32>
    %16 = arith.maximumf %14, %15 : vector<8x128xf32>
    %17 = arith.truncf %16 : vector<8x128xf32> to vector<8x128xbf16>
    %c0_12 = arith.constant 0 : index
    %c0_13 = arith.constant 0 : index
    %18 = vector.load %arg6[%c0_12, %c0_13] : memref<128x128xbf16, #tpu.memory_space<vmem>>, vector<128x128xbf16>
    %cst_14 = arith.constant dense<0.000000e+00> : vector<8x128xf32>
    %19 = tpu.matmul %17, %18, %cst_14 {dimension_numbers = #tpu.dot_dimension_numbers<[1], [0], [0], [1], [0, 0, 1, 1], [], []>} : vector<8x128xbf16>, vector<128x128xbf16>, vector<8x128xf32> -> vector<8x128xf32>
    %c0_15 = arith.constant 0 : index
    %c0_16 = arith.constant 0 : index
    %20 = vector.load %arg7[%c0_15, %c0_16] : memref<1x128xf32, #tpu.memory_space<vmem>>, vector<1x128xf32>
    %21 = vector.broadcast %20 : vector<1x128xf32> to vector<8x128xf32>
    %22 = arith.addf %19, %21 : vector<8x128xf32>
    %23 = arith.truncf %22 : vector<8x128xf32> to vector<8x128xbf16>
    %c0_17 = arith.constant 0 : index
    %c0_18 = arith.constant 0 : index
    %24 = vector.load %arg8[%c0_17, %c0_18] : memref<8x128xbf16, #tpu.memory_space<vmem>>, vector<8x128xbf16>
    tpu.vector_store %arg8[%c0_17, %c0_18], %23 {strides = array<i32>} : memref<8x128xbf16, #tpu.memory_space<vmem>>, vector<8x128xbf16>,
    return
  }
  func.func @transform_0(%arg0: i32) -> (i32, i32) {
    %c0_i32 = arith.constant 0 : i32
    %c0_i32_0 = arith.constant 0 : i32
    return %arg0, %c0_i32 : i32, i32
  }
  func.func @transform_1(%arg0: i32) -> (i32, i32) {
    %c0_i32 = arith.constant 0 : i32
    %c0_i32_0 = arith.constant 0 : i32
    %c0_i32_1 = arith.constant 0 : i32
    return %c0_i32, %c0_i32_0 : i32, i32
  }
  func.func @transform_2(%arg0: i32) -> (i32, i32) {
    %c0_i32 = arith.constant 0 : i32
    %c0_i32_0 = arith.constant 0 : i32
    %c0_i32_1 = arith.constant 0 : i32
    return %c0_i32, %c0_i32_0 : i32, i32
  }
  func.func @transform_3(%arg0: i32) -> (i32, i32) {
    %c0_i32 = arith.constant 0 : i32
    %c0_i32_0 = arith.constant 0 : i32
    %c0_i32_1 = arith.constant 0 : i32
    return %c0_i32, %c0_i32_0 : i32, i32
  }
  func.func @transform_4(%arg0: i32) -> (i32, i32) {
    %c0_i32 = arith.constant 0 : i32
    %c0_i32_0 = arith.constant 0 : i32
    %c0_i32_1 = arith.constant 0 : i32
    return %c0_i32, %c0_i32_0 : i32, i32
  }
  func.func @transform_5(%arg0: i32) -> (i32, i32) {
    %c0_i32 = arith.constant 0 : i32
    %c0_i32_0 = arith.constant 0 : i32
    %c0_i32_1 = arith.constant 0 : i32
    return %c0_i32, %c0_i32_0 : i32, i32
  }
  func.func @transform_6(%arg0: i32) -> (i32, i32) {
    %c0_i32 = arith.constant 0 : i32
    %c0_i32_0 = arith.constant 0 : i32
    %c0_i32_1 = arith.constant 0 : i32
    return %c0_i32, %c0_i32_0 : i32, i32
  }
  func.func @transform_7(%arg0: i32) -> (i32, i32) {
    %c0_i32 = arith.constant 0 : i32
    %c0_i32_0 = arith.constant 0 : i32
    return %arg0, %c0_i32 : i32, i32
  }
}

</mosaic_0001>

<bundles_post_ra>
// kernel: tpu_custom_call.1
= control target key start
LH: loop header
LB: loop body
LE: loop exit
PB: predicated region body
PF: predicated region fallthrough
CT: control target
= control target key end

     0   :  { %12 = vsyncpa [#allocation3], 0  ;;  %s602_s0 = inlined_call_operand.hbm [shape: f32[8,16], index: 0, kind: input, shape index: {}]   ;;  %s603_s1 = inlined_call_operand.hbm [shape: bf16[16,128], index: 1, kind: input, shape index: {}]   ;;  %s604_s2 = inlined_call_operand.vmem [shape: f32[1,128], index: 2, kind: input, shape index: {}]   ;;  %s605_s3 = inlined_call_operand.hbm [shape: bf16[128,128], index: 3, kind: input, shape index: {}]   ;;  %s606_s4 = inlined_call_operand.vmem [shape: f32[1,128], index: 4, kind: input, shape index: {}]   ;;  %s607_s5 = inlined_call_operand.hbm [shape: bf16[128,128], index: 5, kind: input, shape index: {}]   ;;  %s608_s6 = inlined_call_operand.vmem [shape: f32[1,128], index: 6, kind: input, shape index: {}]   ;;  %s609_s7 = inlined_call_operand.hbm [shape: bf16[8,128], index: 7, kind: output, shape index: {}]  }
   0x1   :  { %13 = vsyncpa [#allocation6], 0 }
   0x2   :  { %14 = vsyncpa [#allocation9], 0  ;;  %s31_s26 = sshll.u32 %s603_s1, 4  ;;  %s32_s26 = int_to_ptr.hbm [resolvable:$true] %s31_s26 }
   0x3   :  { %15 = vsyncpa [#allocation4], 0  ;;  %s531_s27 = smov [#allocation5]   ;;  %s21_s8 = sshll.u32 %s602_s0, 4  ;;  %s22_s8 = int_to_ptr.hbm [resolvable:$true] %s21_s8 }
   0x4   :  { %s33_s28 = sshll.u32 %s531_s27, 4  ;;  %s532_s9 = smov 64   ;;  %s34_s28 = int_to_ptr.vmem [resolvable:$true] %s33_s28 }
   0x5   :  { %s533_s10 = smov 4   ;;  %s534_s11 = smov [#allocation2]  }
   0x6   :  { %39 = dma.hbm_to_vmem [thread:$0]  %s32_s26, 128, %s34_s28, [#allocation6], %s532_s9, %s532_s9, %s533_s10  }
   0x7   :  { %s23_s12 = sshll.u32 %s534_s11, 4  ;;  %s46_s15 = sshll.u32 %s605_s3, 4  ;;  %s24_s12 = int_to_ptr.vmem [resolvable:$true] %s23_s12  ;;  %s47_s15 = int_to_ptr.hbm [resolvable:$true] %s46_s15 }
   0x8   :  { %26 = dma.hbm_to_vmem [thread:$0]  %s22_s8, 128, %s24_s12, [#allocation3]  }
   0x9   :  { %s61_s17 = sshll.u32 %s607_s5, 4  ;;  %s535_s18 = smov [#allocation7]   ;;  %s62_s17 = int_to_ptr.hbm [resolvable:$true] %s61_s17 }
   0xa   :  { %s48_s19 = sshll.u32 %s535_s18, 4  ;;  %s536_s0 = smov [#allocation8]   ;;  %s49_s19 = int_to_ptr.vmem [resolvable:$true] %s48_s19 }
   0xb   :  { %54 = dma.hbm_to_vmem [thread:$0]  %s47_s15, 1024, %s49_s19, [#allocation6], %s532_s9, %s532_s9, %s533_s10  }
   0xc   :  { %s63_s20 = sshll.u32 %s536_s0, 4  ;;  %s64_s20 = int_to_ptr.vmem [resolvable:$true] %s63_s20 }
   0xd   :  { %69 = dma.hbm_to_vmem [thread:$0]  %s62_s17, 1024, %s64_s20, [#allocation9], %s532_s9, %s532_s9, %s533_s10  }
   0xe   :  { %523 = dma.done.wait [#allocation3], 128  }
   0xf   :  { %524 = vsyncadd [#allocation3], 4294967168 }
  0x10   :  { %525 = dma.done.wait [#allocation6], 1152  }
  0x11   :  { %526 = vsyncadd [#allocation6], 4294966144 }
  0x12   :  { %527 = dma.done.wait [#allocation9], 1024  }
  0x13   :  { %528 = vsyncadd [#allocation9], 4294966272  ;;  %v376_v0 = vld [vmem:[#allocation5] sm:$0xff]  ;;  %v89_v1 = vld [vmem:[#allocation2] sm:$0xff]  ;;  %vm103_vm0 = vcmask 130048   ;;  %s537_s24 = smov [#allocation10]  }
  0x14   :  { %v384_v2 = vld [vmem:[#allocation7 + $0x38] sm:$0xff]  ;;  %v90_v3 = vpack.c.bf16 %v89_v1, %v89_v1  ;;  %114 = vmatpush.bf16.msra.mxu0 %v376_v0  ;;  %v383_v4 = vld [vmem:[#allocation7 + $0x30] sm:$0xff]  ;;  %v382_v5 = vld [vmem:[#allocation7 + $0x28] sm:$0xff]  ;;  %s293_s25 = sshll.u32 %s537_s24, 4  ;;  %s295_s28 = sshll.u32 %s609_s7, 4  ;;  %s294_s25 = int_to_ptr.vmem [resolvable:$true] %s293_s25  ;;  %s296_s28 = int_to_ptr.hbm [resolvable:$true] %s295_s28 }
  0x15   :  { %190 = vmatpush.bf16.msra.mxu1 %v384_v2  ;;  %v381_v6 = vld [vmem:[#allocation7 + $0x20] sm:$0xff]  ;;  %v380_v7 = vld [vmem:[#allocation7 + $0x18] sm:$0xff]  ;;  %v379_v8 = vld [vmem:[#allocation7 + $0x10] sm:$0xff] }
  0x16   :  { %v378_v9 = vld [vmem:[#allocation7 + $0x8] sm:$0xff]  ;;  %v377_v10 = vld [vmem:[#allocation7] sm:$0xff]  ;;  %v392_v11 = vld [vmem:[#allocation8 + $0x38] sm:$0xff] }
  0x17   :  { %311 = vmatmul.msk.bf16.vlgmr.msra.gmra.mxu0 %vm103_vm0, %v90_v3  ;;  %273 = vmatpush.bf16.msra.mxu2 %v392_v11  ;;  %v391_v12 = vld [vmem:[#allocation8 + $0x30] sm:$0xff]  ;;  %v390_v13 = vld [vmem:[#allocation8 + $0x28] sm:$0xff]  ;;  %v389_v14 = vld [vmem:[#allocation8 + $0x20] sm:$0xff] }
  0x18   :  { %v388_v15 = vld [vmem:[#allocation8 + $0x18] sm:$0xff]  ;;  %v387_v16 = vld [vmem:[#allocation8 + $0x10] sm:$0xff]  ;;  %v386_v23 = vld [vmem:[#allocation8 + $0x8] sm:$0xff] }
  0x19   :  { %191 = vmatpush.bf16.msra.mxu1 %v383_v4  ;;  %v400_v17 = vld [vmem:[%s604_s2] ss:$0 sm:$0xff]  ;;  %v385_v24 = vld [vmem:[#allocation8] sm:$0xff] }
  0x1a   :  { %v401_v25 = vld [vmem:[%s606_s4] ss:$0 sm:$0xff] }
  0x1b   :  { %274 = vmatpush.bf16.msra.mxu2 %v391_v12  ;;  %v402_v31 = vld [vmem:[%s608_s6] ss:$0 sm:$0xff] }
  0x1d   :  { %192 = vmatpush.bf16.msra.mxu1 %v382_v5 }
  0x1f   :  { %275 = vmatpush.bf16.msra.mxu2 %v390_v13 }
  0x21   :  { %193 = vmatpush.bf16.msra.mxu1 %v381_v6 }
  0x23   :  { %276 = vmatpush.bf16.msra.mxu2 %v389_v14 }
  0x25   :  { %194 = vmatpush.bf16.msra.mxu1 %v380_v7 }
  0x27   :  { %277 = vmatpush.bf16.msra.mxu2 %v388_v15 }
  0x29   :  { %195 = vmatpush.bf16.msra.mxu1 %v379_v8 }
  0x2b   :  { %278 = vmatpush.bf16.msra.mxu2 %v387_v16 }
  0x2d   :  { %196 = vmatpush.bf16.msra.mxu1 %v378_v9 }
  0x2f   :  { %279 = vmatpush.bf16.msra.mxu2 %v386_v23 }
  0x31   :  { %197 = vmatpush.bf16.msra.mxu1 %v377_v10 }
  0x33   :  { %280 = vmatpush.bf16.msra.mxu2 %v385_v24 }
  0x94   :  { %v116_v18 = vpop.f32.mrf.mxu0 }
  0x95   :  { %v117_v19 = vadd.f32 %v400_v17, %v116_v18 }
  0x97   :  { %v120_v20 = vmax.f32 %v117_v19, 0.0 }
  0x99   :  { %v121_v21 = vpack.c.bf16 %v120_v20, %v120_v20 }
  0x9b   :  { %198 = vmatmul.bf16.vlgmr.msra.gmra.mxu1 %v121_v21 }
  0x9c   :  { %v118_v22 = vpop.f32.mrf.mxu0 }
 0x118   :  { %v199_v26 = vpop.f32.mrf.mxu1 }
 0x119   :  { %v200_v27 = vadd.f32 %v401_v25, %v199_v26 }
 0x11b   :  { %v203_v28 = vmax.f32 %v200_v27, 0.0 }
 0x11d   :  { %v204_v29 = vpack.c.bf16 %v203_v28, %v203_v28 }
 0x11f   :  { %281 = vmatmul.bf16.vlgmr.msra.gmra.mxu2 %v204_v29 }
 0x120   :  { %v201_v30 = vpop.f32.mrf.mxu1 }
 0x1a2   :  { %v282_v32 = vpop.f32.mrf.mxu2 }
 0x1a3   :  { %v283_v33 = vadd.f32 %v402_v31, %v282_v32 }
 0x1a5   :  { %v286_v34 = vpack.c.bf16 %v283_v33, %v283_v33 }
 0x1a7   :  { %287 = vst [vmem:[#allocation10] sm:$0xf] %v286_v34 }
 0x1a8   :  { %298 = dma.vmem_to_hbm [thread:$0]  %s294_s25, 64, %s296_s28, [#allocation4]  }
 0x1aa   :  { %v284_v35 = vpop.f32.mrf.mxu2 }
 0x1ab   :  { %529 = dma.done.wait [#allocation4], 64  }
 0x1ac   :  { %530 = vsyncadd [#allocation4], 4294967232 }
 0x1ad   :  { %303 = vsyncpa [#allocation3], 1 }
 0x1ae   :  { %304 = vsyncpa [#allocation6], 1 }
 0x1af   :  { %305 = vsyncpa [#allocation9], 1 }
 0x1b0   :  { %306 = vsyncpa [#allocation4], 1 }

</bundles_post_ra>
